<compile_context>
chip_gen: v7x
topology: tpu7x:2x2x1
jax: 0.10.0
libtpu: 0.0.40
codegen_flags: <defaults>
</compile_context>

<pallas_src>
import math
import numpy as np
import jax
import jax.numpy as jnp
from jax import lax
from jax.experimental import pallas as pl
from jax.experimental.pallas import tpu as pltpu

# ----------------------------- sizes (scaled down) ---------------------------
B = 8              # batch
S = 16             # seq len
H = 32             # roberta hidden size analog (orig 1024)
D = 2 * H          # entity feature dim / transformer d_model (orig 2048)
NUM_HEADS = 4
HEAD_DIM = D // NUM_HEADS
DFF = 64           # transformer feed-forward dim (orig 2048)
NUM_LABELS = 23
CPAD = 128         # classifier output padded to a full lane width
IMG_FEAT = 64      # resnet logits dim analog (orig 1000)
LN_EPS = 1e-5
KLD_LAMBDA = 0.5
NEG_PAD = -1e30    # folded class-padding mask (goes into b_cls)

HEAD_START, HEAD_END, TAIL_START, TAIL_END = 101, 102, 103, 104

# static sizes implied by the reference's python slicing (delta=0.7, keep 0.4 / 0.8)
B2 = 2 * B                                   # intersamples concat rows          (16)
I1 = int(0.7 / 2 * B2)                       # sample_combination front slice    (5)
I2 = int((1 - 0.7 / 2) * B2)                 # sample_combination back slice     (10)
M_MIX = I1 + (B2 - I2)                       # rows entering mixup               (11)
KEEP = int(0.4 * M_MIX)                      # mixup rows kept                   (4)
KEEP_BF = int((0.5 + 0.6 * 0.5) * B2)        # bf rows kept                      (12)
NCLS = KEEP + KEEP_BF                        # classifier rows (2 sublane tiles) (16)

# ------------------- packed-input slab layouts (row offsets) ------------------
# weight slab: every Linear weight pre-transposed to (in, out); in-dims stacked along rows.
R_QKV = 0
R_O = R_QKV + D
R_W1 = R_O + D
R_W2 = R_W1 + D
R_KL = R_W2 + DFF
R_CLS = R_KL + IMG_FEAT
W_ROWS = R_CLS + D                  # 384
W_WIDTH = max(3 * D, CPAD)          # 192

# vector slab: one row per bias / LayerNorm vector / per-head lane mask.
(V_BQKV, V_BO, V_B1, V_B2, V_LN1G, V_LN1B, V_LN2G, V_LN2B, V_BKL, V_BCLS) = range(10)
V_MASK = 10
V_ROWS = V_MASK + NUM_HEADS         # 14
V_WIDTH = max(3 * D, CPAD)          # 192

# matrix slab: span-pool matrix, weighted-one-hot CE pick matrix, mixup/bf selector.
M_SPAN = 0
M_PICK = M_SPAN + B2                # 16
M_PRE = M_PICK + NCLS               # 32
M_ROWS = M_PRE + NCLS               # 48
M_WIDTH = max(B * S, CPAD, B2)      # 128


# ------------------------------ fused Pallas kernel ---------------------------
def _layer_norm(h, g, b):
    mu = jnp.mean(h, axis=-1, keepdims=True)
    var = jnp.mean((h - mu) ** 2, axis=-1, keepdims=True)
    return (h - mu) * lax.rsqrt(var + LN_EPS) * g + b


def i2srm_fused_kernel(lhs_ref, mats_ref, img_ref, w_ref, vec_ref,
                       loss_ref, logits_ref):
    f32 = jnp.float32

    # ---- static views into the packed slabs (sublane-aligned, lane start 0) ----
    span_w = mats_ref[M_SPAN:M_SPAN + B2, 0:B * S]           # (2B, B*S)
    pick = mats_ref[M_PICK:M_PICK + NCLS, 0:CPAD]            # (16, 128) weighted one-hot
    pre_cls = mats_ref[M_PRE:M_PRE + NCLS, 0:B2]             # (16, 16) mixup/bf selector

    w_qkv = w_ref[R_QKV:R_QKV + D, 0:3 * D]
    w_o = w_ref[R_O:R_O + D, 0:D]
    w_1 = w_ref[R_W1:R_W1 + D, 0:DFF]
    w_2 = w_ref[R_W2:R_W2 + DFF, 0:D]
    w_kl = w_ref[R_KL:R_KL + IMG_FEAT, 0:D]
    w_cls = w_ref[R_CLS:R_CLS + D, 0:CPAD]

    b_qkv = vec_ref[V_BQKV:V_BQKV + 1, 0:3 * D]
    b_o = vec_ref[V_BO:V_BO + 1, 0:D]
    b_1 = vec_ref[V_B1:V_B1 + 1, 0:DFF]
    b_2 = vec_ref[V_B2:V_B2 + 1, 0:D]
    ln1g = vec_ref[V_LN1G:V_LN1G + 1, 0:D]
    ln1b = vec_ref[V_LN1B:V_LN1B + 1, 0:D]
    ln2g = vec_ref[V_LN2G:V_LN2G + 1, 0:D]
    ln2b = vec_ref[V_LN2B:V_LN2B + 1, 0:D]
    b_kl = vec_ref[V_BKL:V_BKL + 1, 0:D]
    b_cls = vec_ref[V_BCLS:V_BCLS + 1, 0:CPAD]               # padded classes hold -1e30

    # ---- entity span mean-pooling as a single MXU matmul ----
    pooled = jnp.dot(span_w, lhs_ref[...], preferred_element_type=f32)   # (2B, H)
    entity = jnp.concatenate([pooled[:B], pooled[B:]], axis=-1)          # (B, D)

    # ---- image regularizer: linear_kl + KLDiv(batchmean)(log_softmax, softmax) ----
    img_reg = jnp.dot(img_ref[...], w_kl, preferred_element_type=f32) + b_kl
    xm = jnp.max(img_reg, axis=-1, keepdims=True)
    log_p = (img_reg - xm) - jnp.log(
        jnp.sum(jnp.exp(img_reg - xm), axis=-1, keepdims=True))
    em = jnp.max(entity, axis=-1, keepdims=True)
    t_un = jnp.exp(entity - em)
    z = jnp.sum(t_un, axis=-1, keepdims=True)
    t = t_un / z
    log_t = (entity - em) - jnp.log(z)
    kl = jnp.sum(t * (log_t - log_p)) * (1.0 / B)

    # ---- post-norm TransformerEncoderLayer over the batch axis (seq=B, batch=1) ----
    x = entity
    qkv = jnp.dot(x, w_qkv, preferred_element_type=f32) + b_qkv          # (B, 3D) fused
    q = qkv[:, 0:D]
    k = qkv[:, D:2 * D]
    v = qkv[:, 2 * D:3 * D]
    scale = 1.0 / math.sqrt(HEAD_DIM)
    attn = jnp.zeros((B, D), f32)
    # head-masked full-width matmuls; masks are precomputed slab rows (no in-loop iota),
    # scores contract over the last dims (no materialized k.T).
    for h in range(NUM_HEADS):
        hm = vec_ref[V_MASK + h:V_MASK + h + 1, 0:D]                     # (1, D)
        s = lax.dot_general(q * hm, k, (((1,), (1,)), ((), ())),
                            preferred_element_type=f32) * scale          # (B, B)
        s = s - jnp.max(s, axis=-1, keepdims=True)
        p = jnp.exp(s)
        p = p / jnp.sum(p, axis=-1, keepdims=True)    # exact divide (correctness review)
        attn = attn + jnp.dot(p, v * hm, preferred_element_type=f32)
    a = jnp.dot(attn, w_o, preferred_element_type=f32) + b_o
    h1 = _layer_norm(x + a, ln1g, ln1b)
    ff = jnp.maximum(jnp.dot(h1, w_1, preferred_element_type=f32) + b_1, 0.0)
    ff = jnp.dot(ff, w_2, preferred_element_type=f32) + b_2
    enc = _layer_norm(h1 + ff, ln2g, ln2b)                               # (B, D)

    # ---- intersamples + sample_combination + mixup + bf truncation: ONE matmul ----
    ent_bf = jnp.concatenate([entity, enc], axis=0)                      # (2B, D)
    cls_in = jnp.dot(pre_cls, ent_bf, preferred_element_type=f32)        # (NCLS, D)

    # ---- lane-dense classifier over mixed + bf rows in one matmul ----
    logits = jnp.dot(cls_in, w_cls, preferred_element_type=f32) + b_cls  # (NCLS, CPAD)
    logits_ref[...] = logits                                             # 16x128, aligned

    # ---- weighted cross-entropy: pick matrix encodes labels, lam and the 1/N means ----
    mx = jnp.max(logits, axis=-1, keepdims=True)
    lse = mx + jnp.log(jnp.sum(jnp.exp(logits - mx), axis=-1, keepdims=True))  # (NCLS, 1)
    row_w = jnp.sum(pick, axis=-1, keepdims=True)                              # (NCLS, 1)
    ce = jnp.sum(row_w * lse) - jnp.sum(pick * logits)

    loss_ref[0] = ce + KLD_LAMBDA * kl


# ------------------------------- jitted wrapper -------------------------------
@jax.jit
def i2srm_forward(lhs_flat, mats_slab, img_feat, w_slab, vec_slab):
    vmem = pl.BlockSpec(memory_space=pltpu.MemorySpace.VMEM)
    smem = pl.BlockSpec(memory_space=pltpu.MemorySpace.SMEM)

    loss_v, logits_full = pl.pallas_call(
        i2srm_fused_kernel,
        in_specs=[vmem, vmem, vmem, vmem, vmem],
        out_specs=(smem, vmem),
        out_shape=(jax.ShapeDtypeStruct((1,), jnp.float32),
                   jax.ShapeDtypeStruct((NCLS, CPAD), jnp.float32)),
    )(lhs_flat, mats_slab, img_feat, w_slab, vec_slab)

    # reference returns the mixed-row logits only
    return loss_v[0], logits_full[:KEEP, :NUM_LABELS]


# ------------------------------- params / host glue ----------------------------
def init_params(key):
    ks = jax.random.split(key, 8)
    sc = 0.05

    def rnd(k, shape):
        return np.asarray(jax.random.normal(k, shape, jnp.float32)) * sc

    w_q = rnd(ks[0], (D, D))
    w_k = rnd(ks[1], (D, D))
    w_v = rnd(ks[2], (D, D))
    w_cls = np.zeros((D, CPAD), np.float32)
    w_cls[:, :NUM_LABELS] = rnd(ks[3], (D, NUM_LABELS))
    b_cls = np.full((CPAD,), NEG_PAD, np.float32)   # folded class-padding mask
    b_cls[:NUM_LABELS] = 0.0
    return dict(
        w_qkv=np.concatenate([w_q, w_k, w_v], axis=1),     # fused QKV (D, 3D)
        w_o=rnd(ks[4], (D, D)),
        w_1=rnd(ks[5], (D, DFF)),
        w_2=rnd(ks[6], (DFF, D)),
        w_kl=rnd(ks[7], (IMG_FEAT, D)),
        w_cls=w_cls,
        b_qkv=np.zeros((3 * D,), np.float32),
        b_o=np.zeros((D,), np.float32),
        b_1=np.zeros((DFF,), np.float32),
        b_2=np.zeros((D,), np.float32),
        ln1_g=np.ones((D,), np.float32), ln1_b=np.zeros((D,), np.float32),
        ln2_g=np.ones((D,), np.float32), ln2_b=np.zeros((D,), np.float32),
        b_kl=np.zeros((D,), np.float32),
        b_cls=b_cls,
    )


def pack_weight_slab(p):
    slab = np.zeros((W_ROWS, W_WIDTH), np.float32)
    for off, w in ((R_QKV, p['w_qkv']), (R_O, p['w_o']), (R_W1, p['w_1']),
                   (R_W2, p['w_2']), (R_KL, p['w_kl']), (R_CLS, p['w_cls'])):
        slab[off:off + w.shape[0], :w.shape[1]] = w
    return slab


def pack_vec_slab(p):
    slab = np.zeros((V_ROWS, V_WIDTH), np.float32)
    slab[V_BQKV, :3 * D] = p['b_qkv']
    slab[V_BO, :D] = p['b_o']
    slab[V_B1, :DFF] = p['b_1']
    slab[V_B2, :D] = p['b_2']
    slab[V_LN1G, :D] = p['ln1_g']
    slab[V_LN1B, :D] = p['ln1_b']
    slab[V_LN2G, :D] = p['ln2_g']
    slab[V_LN2B, :D] = p['ln2_b']
    slab[V_BKL, :D] = p['b_kl']
    slab[V_BCLS, :CPAD] = p['b_cls']
    for h in range(NUM_HEADS):                              # per-head lane masks
        slab[V_MASK + h, h * HEAD_DIM:(h + 1) * HEAD_DIM] = 1.0
    return slab


def compute_span_weights(input_ids_np):
    """Host-side marker lookup (matches the .item()-based loop in the reference).
    Returns per-token mean-pooling weights (1/count inside the span, 0 elsewhere)."""
    b, s = input_ids_np.shape
    wh = np.zeros((b, s), np.float32)
    wt = np.zeros((b, s), np.float32)
    for i in range(b):
        row = input_ids_np[i]
        head_idx = int(np.nonzero(row == HEAD_START)[0][0])
        head_end = int(np.nonzero(row == HEAD_END)[0][0]) if (row == HEAD_END).any() else head_idx + 2
        tail_idx = int(np.nonzero(row == TAIL_START)[0][0])
        tail_end = int(np.nonzero(row == TAIL_END)[0][0]) if (row == TAIL_END).any() else tail_idx + 2
        hs, he = head_idx + 1, head_end
        ts, te = tail_idx + 1, tail_end
        if he > hs:
            wh[i, hs:he] = 1.0 / max(he - hs, 1)
        if te > ts:
            wt[i, ts:te] = 1.0 / max(te - ts, 1)
    return wh, wt


def build_span_matrix(wh, wt):
    """(2B, B*S) block-diagonal span matrix; rows 0..B-1 = head spans, B..2B-1 = tail."""
    sw = np.zeros((B2, B * S), np.float32)
    for b in range(B):
        sw[b, b * S:(b + 1) * S] = wh[b]
        sw[B + b, b * S:(b + 1) * S] = wt[b]
    return sw


def _sample_combination_rows():
    return list(range(I1)) + list(range(I2, B2))            # 11 row indices into ent_bf


def build_pre_cls(lam, index):
    """(NCLS, 2B) selector: rows 0..KEEP-1 = lam-mixed rows, rows KEEP.. = bf rows."""
    sel = _sample_combination_rows()
    m = np.zeros((NCLS, B2), np.float32)
    for i in range(KEEP):
        m[i, sel[i]] += lam
        m[i, sel[int(index[i])]] += 1.0 - lam
    for j in range(KEEP_BF):
        m[KEEP + j, j] += 1.0
    return m


def build_pick(lam, labels, index):
    """Weighted one-hot pick matrix so that
    sum(rowsum(pick)*lse) - sum(pick*logits) == lam*CE_a + (1-lam)*CE_b + CE_bf."""
    sel = _sample_combination_rows()
    labels_cat = np.concatenate([labels, labels], axis=0)
    y = labels_cat[sel]
    y_a = y[:KEEP]
    y_b = y[index][:KEEP]
    y_bf = labels_cat[:KEEP_BF]
    pk = np.zeros((NCLS, CPAD), np.float32)
    for i in range(KEEP):
        pk[i, int(y_a[i])] += lam / KEEP
        pk[i, int(y_b[i])] += (1.0 - lam) / KEEP
    for j in range(KEEP_BF):
        pk[KEEP + j, int(y_bf[j])] += 1.0 / KEEP_BF
    return pk


def build_mats_slab(span_w, pick, pre_cls):
    slab = np.zeros((M_ROWS, M_WIDTH), np.float32)
    slab[M_SPAN:M_SPAN + B2, :B * S] = span_w
    slab[M_PICK:M_PICK + NCLS, :CPAD] = pick
    slab[M_PRE:M_PRE + NCLS, :B2] = pre_cls
    return slab


# ------------------------------------ main --------------------------------------
if __name__ == "__main__":
    rng = np.random.default_rng(0)
    key = jax.random.PRNGKey(0)
    kp, k1, k2, k3 = jax.random.split(key, 4)
    params = init_params(kp)

    # synthetic token ids containing the entity markers
    input_ids = np.full((B, S), 7, dtype=np.int32)
    input_ids[:, 0] = 0
    input_ids[:, 2] = HEAD_START
    input_ids[:, 5] = HEAD_END
    input_ids[:, 8] = TAIL_START
    input_ids[:, 11] = TAIL_END

    last_hidden_state = jax.random.normal(k1, (B, S, H), jnp.float32)  # roberta output stand-in
    img_feat = jax.random.normal(k2, (B, IMG_FEAT), jnp.float32)       # resnet output stand-in
    labels = np.asarray(jax.random.randint(k3, (B,), 0, NUM_LABELS, jnp.int32))

    # host-side randomness / span lookup, folded into the packed matrices
    wh, wt = compute_span_weights(input_ids)
    span_w = build_span_matrix(wh, wt)
    lam = float(rng.beta(1.0, 1.0))
    index = rng.permutation(M_MIX)
    mats_slab = build_mats_slab(span_w, build_pick(lam, labels, index),
                                build_pre_cls(lam, index))

    lhs_flat = jnp.reshape(last_hidden_state, (B * S, H))
    w_slab = jnp.asarray(pack_weight_slab(params))
    vec_slab = jnp.asarray(pack_vec_slab(params))

    loss, logits = i2srm_forward(lhs_flat, jnp.asarray(mats_slab), img_feat,
                                 w_slab, vec_slab)
    jax.block_until_ready((loss, logits))
    print("KERNEL_OK")
</pallas_src>

<mosaic_0001>
module attributes {stable_mosaic.version = 11 : i64} {
  func.func @i2srm_fused_kernel(%arg0: memref<128x32xf32, #tpu.memory_space<vmem>>, %arg1: memref<48x128xf32, #tpu.memory_space<vmem>>, %arg2: memref<8x64xf32, #tpu.memory_space<vmem>>, %arg3: memref<384x192xf32, #tpu.memory_space<vmem>>, %arg4: memref<14x192xf32, #tpu.memory_space<vmem>>, %arg5: memref<1xf32, #tpu.memory_space<smem>>, %arg6: memref<16x128xf32, #tpu.memory_space<vmem>>) attributes {dimension_semantics = [], scalar_prefetch = 0 : i64, scratch_operands = 0 : i64, tpu.core_type = #tpu.core_type<tc>} {
    %c0 = arith.constant 0 : index
    %c0_0 = arith.constant 0 : index
    %0 = vector.load %arg1[%c0, %c0_0] : memref<48x128xf32, #tpu.memory_space<vmem>>, vector<16x128xf32>
    %c16 = arith.constant 16 : index
    %c0_1 = arith.constant 0 : index
    %1 = vector.load %arg1[%c16, %c0_1] : memref<48x128xf32, #tpu.memory_space<vmem>>, vector<16x128xf32>
    %c32 = arith.constant 32 : index
    %c0_2 = arith.constant 0 : index
    %2 = vector.load %arg1[%c32, %c0_2] : memref<48x128xf32, #tpu.memory_space<vmem>>, vector<16x16xf32>
    %c0_3 = arith.constant 0 : index
    %c0_4 = arith.constant 0 : index
    %3 = vector.load %arg3[%c0_3, %c0_4] : memref<384x192xf32, #tpu.memory_space<vmem>>, vector<64x192xf32>
    %c64 = arith.constant 64 : index
    %c0_5 = arith.constant 0 : index
    %4 = vector.load %arg3[%c64, %c0_5] : memref<384x192xf32, #tpu.memory_space<vmem>>, vector<64x64xf32>
    %c128 = arith.constant 128 : index
    %c0_6 = arith.constant 0 : index
    %5 = vector.load %arg3[%c128, %c0_6] : memref<384x192xf32, #tpu.memory_space<vmem>>, vector<64x64xf32>
    %c192 = arith.constant 192 : index
    %c0_7 = arith.constant 0 : index
    %6 = vector.load %arg3[%c192, %c0_7] : memref<384x192xf32, #tpu.memory_space<vmem>>, vector<64x64xf32>
    %c256 = arith.constant 256 : index
    %c0_8 = arith.constant 0 : index
    %7 = vector.load %arg3[%c256, %c0_8] : memref<384x192xf32, #tpu.memory_space<vmem>>, vector<64x64xf32>
    %c320 = arith.constant 320 : index
    %c0_9 = arith.constant 0 : index
    %8 = vector.load %arg3[%c320, %c0_9] : memref<384x192xf32, #tpu.memory_space<vmem>>, vector<64x128xf32>
    %c0_10 = arith.constant 0 : index
    %c0_11 = arith.constant 0 : index
    %9 = vector.load %arg4[%c0_10, %c0_11] : memref<14x192xf32, #tpu.memory_space<vmem>>, vector<1x192xf32>
    %c1 = arith.constant 1 : index
    %c0_12 = arith.constant 0 : index
    %10 = vector.load %arg4[%c1, %c0_12] : memref<14x192xf32, #tpu.memory_space<vmem>>, vector<1x64xf32>
    %c2 = arith.constant 2 : index
    %c0_13 = arith.constant 0 : index
    %11 = vector.load %arg4[%c2, %c0_13] : memref<14x192xf32, #tpu.memory_space<vmem>>, vector<1x64xf32>
    %c3 = arith.constant 3 : index
    %c0_14 = arith.constant 0 : index
    %12 = vector.load %arg4[%c3, %c0_14] : memref<14x192xf32, #tpu.memory_space<vmem>>, vector<1x64xf32>
    %c4 = arith.constant 4 : index
    %c0_15 = arith.constant 0 : index
    %13 = vector.load %arg4[%c4, %c0_15] : memref<14x192xf32, #tpu.memory_space<vmem>>, vector<1x64xf32>
    %c5 = arith.constant 5 : index
    %c0_16 = arith.constant 0 : index
    %14 = vector.load %arg4[%c5, %c0_16] : memref<14x192xf32, #tpu.memory_space<vmem>>, vector<1x64xf32>
    %c6 = arith.constant 6 : index
    %c0_17 = arith.constant 0 : index
    %15 = vector.load %arg4[%c6, %c0_17] : memref<14x192xf32, #tpu.memory_space<vmem>>, vector<1x64xf32>
    %c7 = arith.constant 7 : index
    %c0_18 = arith.constant 0 : index
    %16 = vector.load %arg4[%c7, %c0_18] : memref<14x192xf32, #tpu.memory_space<vmem>>, vector<1x64xf32>
    %c8 = arith.constant 8 : index
    %c0_19 = arith.constant 0 : index
    %17 = vector.load %arg4[%c8, %c0_19] : memref<14x192xf32, #tpu.memory_space<vmem>>, vector<1x64xf32>
    %c9 = arith.constant 9 : index
    %c0_20 = arith.constant 0 : index
    %18 = vector.load %arg4[%c9, %c0_20] : memref<14x192xf32, #tpu.memory_space<vmem>>, vector<1x128xf32>
    %c0_21 = arith.constant 0 : index
    %c0_22 = arith.constant 0 : index
    %19 = vector.load %arg0[%c0_21, %c0_22] : memref<128x32xf32, #tpu.memory_space<vmem>>, vector<128x32xf32>
    %cst = arith.constant dense<0.000000e+00> : vector<16x32xf32>
    %20 = tpu.matmul %0, %19, %cst {dimension_numbers = #tpu.dot_dimension_numbers<[1], [0], [0], [1], [0, 0, 1, 1], [], []>} : vector<16x128xf32>, vector<128x32xf32>, vector<16x32xf32> -> vector<16x32xf32>
    %21 = vector.extract_strided_slice %20 {offsets = [0, 0], sizes = [8, 32], strides = [1, 1]} : vector<16x32xf32> to vector<8x32xf32>
    %22 = vector.extract_strided_slice %20 {offsets = [8, 0], sizes = [8, 32], strides = [1, 1]} : vector<16x32xf32> to vector<8x32xf32>
    %23 = tpu.concatenate %21, %22 in 1 : vector<8x32xf32>, vector<8x32xf32> -> vector<8x64xf32>
    %c0_23 = arith.constant 0 : index
    %c0_24 = arith.constant 0 : index
    %24 = vector.load %arg2[%c0_23, %c0_24] : memref<8x64xf32, #tpu.memory_space<vmem>>, vector<8x64xf32>
    %cst_25 = arith.constant dense<0.000000e+00> : vector<8x64xf32>
    %25 = tpu.matmul %24, %7, %cst_25 {dimension_numbers = #tpu.dot_dimension_numbers<[1], [0], [0], [1], [0, 0, 1, 1], [], []>} : vector<8x64xf32>, vector<64x64xf32>, vector<8x64xf32> -> vector<8x64xf32>
    %26 = vector.broadcast %17 : vector<1x64xf32> to vector<8x64xf32>
    %27 = arith.addf %25, %26 : vector<8x64xf32>
    %cst_26 = arith.constant dense<0xFF800000> : vector<8xf32>
    %28 = vector.multi_reduction <maximumf>, %27, %cst_26 [1] : vector<8x64xf32> to vector<8xf32>
    %29 = vector.shape_cast %28 : vector<8xf32> to vector<8x1xf32>
    %30 = vector.broadcast %29 : vector<8x1xf32> to vector<8x64xf32>
    %31 = arith.subf %27, %30 : vector<8x64xf32>
    %32 = vector.broadcast %29 : vector<8x1xf32> to vector<8x64xf32>
    %33 = arith.subf %27, %32 : vector<8x64xf32>
    %34 = math.exp %33 : vector<8x64xf32>
    %cst_27 = arith.constant dense<0.000000e+00> : vector<8xf32>
    %35 = vector.multi_reduction <add>, %34, %cst_27 [1] : vector<8x64xf32> to vector<8xf32>
    %36 = vector.shape_cast %35 : vector<8xf32> to vector<8x1xf32>
    %37 = math.log %36 : vector<8x1xf32>
    %38 = vector.broadcast %37 : vector<8x1xf32> to vector<8x64xf32>
    %39 = arith.subf %31, %38 : vector<8x64xf32>
    %cst_28 = arith.constant dense<0xFF800000> : vector<8xf32>
    %40 = vector.multi_reduction <maximumf>, %23, %cst_28 [1] : vector<8x64xf32> to vector<8xf32>
    %41 = vector.shape_cast %40 : vector<8xf32> to vector<8x1xf32>
    %42 = vector.broadcast %41 : vector<8x1xf32> to vector<8x64xf32>
    %43 = arith.subf %23, %42 : vector<8x64xf32>
    %44 = math.exp %43 : vector<8x64xf32>
    %cst_29 = arith.constant dense<0.000000e+00> : vector<8xf32>
    %45 = vector.multi_reduction <add>, %44, %cst_29 [1] : vector<8x64xf32> to vector<8xf32>
    %46 = vector.shape_cast %45 : vector<8xf32> to vector<8x1xf32>
    %47 = vector.broadcast %46 : vector<8x1xf32> to vector<8x64xf32>
    %48 = arith.divf %44, %47 : vector<8x64xf32>
    %49 = vector.broadcast %41 : vector<8x1xf32> to vector<8x64xf32>
    %50 = arith.subf %23, %49 : vector<8x64xf32>
    %51 = math.log %46 : vector<8x1xf32>
    %52 = vector.broadcast %51 : vector<8x1xf32> to vector<8x64xf32>
    %53 = arith.subf %50, %52 : vector<8x64xf32>
    %54 = arith.subf %53, %39 : vector<8x64xf32>
    %55 = arith.mulf %48, %54 : vector<8x64xf32>
    %56 = vector.shape_cast %55 : vector<8x64xf32> to vector<1x8x64xf32>
    %cst_30 = arith.constant dense<0.000000e+00> : vector<1xf32>
    %57 = vector.multi_reduction <add>, %56, %cst_30 [1, 2] : vector<1x8x64xf32> to vector<1xf32>
    %58 = vector.shape_cast %57 : vector<1xf32> to vector<1x1x1xf32>
    %59 = vector.extract %58[0, 0, 0] : f32 from vector<1x1x1xf32>
    %cst_31 = arith.constant 1.250000e-01 : f32
    %60 = arith.mulf %59, %cst_31 : f32
    %cst_32 = arith.constant dense<0.000000e+00> : vector<8x192xf32>
    %61 = tpu.matmul %23, %3, %cst_32 {dimension_numbers = #tpu.dot_dimension_numbers<[1], [0], [0], [1], [0, 0, 1, 1], [], []>} : vector<8x64xf32>, vector<64x192xf32>, vector<8x192xf32> -> vector<8x192xf32>
    %62 = vector.broadcast %9 : vector<1x192xf32> to vector<8x192xf32>
    %63 = arith.addf %61, %62 : vector<8x192xf32>
    %64 = vector.extract_strided_slice %63 {offsets = [0, 0], sizes = [8, 64], strides = [1, 1]} : vector<8x192xf32> to vector<8x64xf32>
    %65 = vector.extract_strided_slice %63 {offsets = [0, 64], sizes = [8, 64], strides = [1, 1]} : vector<8x192xf32> to vector<8x64xf32>
    %66 = vector.extract_strided_slice %63 {offsets = [0, 128], sizes = [8, 64], strides = [1, 1]} : vector<8x192xf32> to vector<8x64xf32>
    %cst_33 = arith.constant 0.000000e+00 : f32
    %67 = vector.broadcast %cst_33 : f32 to vector<8x64xf32>
    %c10 = arith.constant 10 : index
    %c0_34 = arith.constant 0 : index
    %68 = vector.load %arg4[%c10, %c0_34] : memref<14x192xf32, #tpu.memory_space<vmem>>, vector<1x64xf32>
    %69 = vector.broadcast %68 : vector<1x64xf32> to vector<8x64xf32>
    %70 = arith.mulf %64, %69 : vector<8x64xf32>
    %cst_35 = arith.constant dense<0.000000e+00> : vector<8x8xf32>
    %71 = tpu.matmul %70, %65, %cst_35 {dimension_numbers = #tpu.dot_dimension_numbers<[1], [1], [0], [0], [0, 0, 1, 0], [], []>} : vector<8x64xf32>, vector<8x64xf32>, vector<8x8xf32> -> vector<8x8xf32>
    %cst_36 = arith.constant 2.500000e-01 : f32
    %72 = vector.broadcast %cst_36 : f32 to vector<8x8xf32>
    %73 = arith.mulf %71, %72 : vector<8x8xf32>
    %cst_37 = arith.constant dense<0xFF800000> : vector<8xf32>
    %74 = vector.multi_reduction <maximumf>, %73, %cst_37 [1] : vector<8x8xf32> to vector<8xf32>
    %75 = vector.shape_cast %74 : vector<8xf32> to vector<8x1xf32>
    %76 = vector.broadcast %75 : vector<8x1xf32> to vector<8x8xf32>
    %77 = arith.subf %73, %76 : vector<8x8xf32>
    %78 = math.exp %77 : vector<8x8xf32>
    %cst_38 = arith.constant dense<0.000000e+00> : vector<8xf32>
    %79 = vector.multi_reduction <add>, %78, %cst_38 [1] : vector<8x8xf32> to vector<8xf32>
    %80 = vector.shape_cast %79 : vector<8xf32> to vector<8x1xf32>
    %81 = vector.broadcast %80 : vector<8x1xf32> to vector<8x8xf32>
    %82 = arith.divf %78, %81 : vector<8x8xf32>
    %83 = vector.broadcast %68 : vector<1x64xf32> to vector<8x64xf32>
    %84 = arith.mulf %66, %83 : vector<8x64xf32>
    %cst_39 = arith.constant dense<0.000000e+00> : vector<8x64xf32>
    %85 = tpu.matmul %82, %84, %cst_39 {dimension_numbers = #tpu.dot_dimension_numbers<[1], [0], [0], [1], [0, 0, 1, 1], [], []>} : vector<8x8xf32>, vector<8x64xf32>, vector<8x64xf32> -> vector<8x64xf32>
    %86 = arith.addf %67, %85 : vector<8x64xf32>
    %c11 = arith.constant 11 : index
    %c0_40 = arith.constant 0 : index
    %87 = vector.load %arg4[%c11, %c0_40] : memref<14x192xf32, #tpu.memory_space<vmem>>, vector<1x64xf32>
    %88 = vector.broadcast %87 : vector<1x64xf32> to vector<8x64xf32>
    %89 = arith.mulf %64, %88 : vector<8x64xf32>
    %cst_41 = arith.constant dense<0.000000e+00> : vector<8x8xf32>
    %90 = tpu.matmul %89, %65, %cst_41 {dimension_numbers = #tpu.dot_dimension_numbers<[1], [1], [0], [0], [0, 0, 1, 0], [], []>} : vector<8x64xf32>, vector<8x64xf32>, vector<8x8xf32> -> vector<8x8xf32>
    %cst_42 = arith.constant 2.500000e-01 : f32
    %91 = vector.broadcast %cst_42 : f32 to vector<8x8xf32>
    %92 = arith.mulf %90, %91 : vector<8x8xf32>
    %cst_43 = arith.constant dense<0xFF800000> : vector<8xf32>
    %93 = vector.multi_reduction <maximumf>, %92, %cst_43 [1] : vector<8x8xf32> to vector<8xf32>
    %94 = vector.shape_cast %93 : vector<8xf32> to vector<8x1xf32>
    %95 = vector.broadcast %94 : vector<8x1xf32> to vector<8x8xf32>
    %96 = arith.subf %92, %95 : vector<8x8xf32>
    %97 = math.exp %96 : vector<8x8xf32>
    %cst_44 = arith.constant dense<0.000000e+00> : vector<8xf32>
    %98 = vector.multi_reduction <add>, %97, %cst_44 [1] : vector<8x8xf32> to vector<8xf32>
    %99 = vector.shape_cast %98 : vector<8xf32> to vector<8x1xf32>
    %100 = vector.broadcast %99 : vector<8x1xf32> to vector<8x8xf32>
    %101 = arith.divf %97, %100 : vector<8x8xf32>
    %102 = vector.broadcast %87 : vector<1x64xf32> to vector<8x64xf32>
    %103 = arith.mulf %66, %102 : vector<8x64xf32>
    %cst_45 = arith.constant dense<0.000000e+00> : vector<8x64xf32>
    %104 = tpu.matmul %101, %103, %cst_45 {dimension_numbers = #tpu.dot_dimension_numbers<[1], [0], [0], [1], [0, 0, 1, 1], [], []>} : vector<8x8xf32>, vector<8x64xf32>, vector<8x64xf32> -> vector<8x64xf32>
    %105 = arith.addf %86, %104 : vector<8x64xf32>
    %c12 = arith.constant 12 : index
    %c0_46 = arith.constant 0 : index
    %106 = vector.load %arg4[%c12, %c0_46] : memref<14x192xf32, #tpu.memory_space<vmem>>, vector<1x64xf32>
    %107 = vector.broadcast %106 : vector<1x64xf32> to vector<8x64xf32>
    %108 = arith.mulf %64, %107 : vector<8x64xf32>
    %cst_47 = arith.constant dense<0.000000e+00> : vector<8x8xf32>
    %109 = tpu.matmul %108, %65, %cst_47 {dimension_numbers = #tpu.dot_dimension_numbers<[1], [1], [0], [0], [0, 0, 1, 0], [], []>} : vector<8x64xf32>, vector<8x64xf32>, vector<8x8xf32> -> vector<8x8xf32>
    %cst_48 = arith.constant 2.500000e-01 : f32
    %110 = vector.broadcast %cst_48 : f32 to vector<8x8xf32>
    %111 = arith.mulf %109, %110 : vector<8x8xf32>
    %cst_49 = arith.constant dense<0xFF800000> : vector<8xf32>
    %112 = vector.multi_reduction <maximumf>, %111, %cst_49 [1] : vector<8x8xf32> to vector<8xf32>
    %113 = vector.shape_cast %112 : vector<8xf32> to vector<8x1xf32>
    %114 = vector.broadcast %113 : vector<8x1xf32> to vector<8x8xf32>
    %115 = arith.subf %111, %114 : vector<8x8xf32>
    %116 = math.exp %115 : vector<8x8xf32>
    %cst_50 = arith.constant dense<0.000000e+00> : vector<8xf32>
    %117 = vector.multi_reduction <add>, %116, %cst_50 [1] : vector<8x8xf32> to vector<8xf32>
    %118 = vector.shape_cast %117 : vector<8xf32> to vector<8x1xf32>
    %119 = vector.broadcast %118 : vector<8x1xf32> to vector<8x8xf32>
    %120 = arith.divf %116, %119 : vector<8x8xf32>
    %121 = vector.broadcast %106 : vector<1x64xf32> to vector<8x64xf32>
    %122 = arith.mulf %66, %121 : vector<8x64xf32>
    %cst_51 = arith.constant dense<0.000000e+00> : vector<8x64xf32>
    %123 = tpu.matmul %120, %122, %cst_51 {dimension_numbers = #tpu.dot_dimension_numbers<[1], [0], [0], [1], [0, 0, 1, 1], [], []>} : vector<8x8xf32>, vector<8x64xf32>, vector<8x64xf32> -> vector<8x64xf32>
    %124 = arith.addf %105, %123 : vector<8x64xf32>
    %c13 = arith.constant 13 : index
    %c0_52 = arith.constant 0 : index
    %125 = vector.load %arg4[%c13, %c0_52] : memref<14x192xf32, #tpu.memory_space<vmem>>, vector<1x64xf32>
    %126 = vector.broadcast %125 : vector<1x64xf32> to vector<8x64xf32>
    %127 = arith.mulf %64, %126 : vector<8x64xf32>
    %cst_53 = arith.constant dense<0.000000e+00> : vector<8x8xf32>
    %128 = tpu.matmul %127, %65, %cst_53 {dimension_numbers = #tpu.dot_dimension_numbers<[1], [1], [0], [0], [0, 0, 1, 0], [], []>} : vector<8x64xf32>, vector<8x64xf32>, vector<8x8xf32> -> vector<8x8xf32>
    %cst_54 = arith.constant 2.500000e-01 : f32
    %129 = vector.broadcast %cst_54 : f32 to vector<8x8xf32>
    %130 = arith.mulf %128, %129 : vector<8x8xf32>
    %cst_55 = arith.constant dense<0xFF800000> : vector<8xf32>
    %131 = vector.multi_reduction <maximumf>, %130, %cst_55 [1] : vector<8x8xf32> to vector<8xf32>
    %132 = vector.shape_cast %131 : vector<8xf32> to vector<8x1xf32>
    %133 = vector.broadcast %132 : vector<8x1xf32> to vector<8x8xf32>
    %134 = arith.subf %130, %133 : vector<8x8xf32>
    %135 = math.exp %134 : vector<8x8xf32>
    %cst_56 = arith.constant dense<0.000000e+00> : vector<8xf32>
    %136 = vector.multi_reduction <add>, %135, %cst_56 [1] : vector<8x8xf32> to vector<8xf32>
    %137 = vector.shape_cast %136 : vector<8xf32> to vector<8x1xf32>
    %138 = vector.broadcast %137 : vector<8x1xf32> to vector<8x8xf32>
    %139 = arith.divf %135, %138 : vector<8x8xf32>
    %140 = vector.broadcast %125 : vector<1x64xf32> to vector<8x64xf32>
    %141 = arith.mulf %66, %140 : vector<8x64xf32>
    %cst_57 = arith.constant dense<0.000000e+00> : vector<8x64xf32>
    %142 = tpu.matmul %139, %141, %cst_57 {dimension_numbers = #tpu.dot_dimension_numbers<[1], [0], [0], [1], [0, 0, 1, 1], [], []>} : vector<8x8xf32>, vector<8x64xf32>, vector<8x64xf32> -> vector<8x64xf32>
    %143 = arith.addf %124, %142 : vector<8x64xf32>
    %cst_58 = arith.constant dense<0.000000e+00> : vector<8x64xf32>
    %144 = tpu.matmul %143, %4, %cst_58 {dimension_numbers = #tpu.dot_dimension_numbers<[1], [0], [0], [1], [0, 0, 1, 1], [], []>} : vector<8x64xf32>, vector<64x64xf32>, vector<8x64xf32> -> vector<8x64xf32>
    %145 = vector.broadcast %10 : vector<1x64xf32> to vector<8x64xf32>
    %146 = arith.addf %144, %145 : vector<8x64xf32>
    %147 = arith.addf %23, %146 : vector<8x64xf32>
    %cst_59 = arith.constant dense<0.000000e+00> : vector<8xf32>
    %148 = vector.multi_reduction <add>, %147, %cst_59 [1] : vector<8x64xf32> to vector<8xf32>
    %149 = vector.shape_cast %148 : vector<8xf32> to vector<8x1xf32>
    %cst_60 = arith.constant 6.400000e+01 : f32
    %150 = vector.broadcast %cst_60 : f32 to vector<8x1xf32>
    %151 = arith.divf %149, %150 : vector<8x1xf32>
    %152 = vector.broadcast %151 : vector<8x1xf32> to vector<8x64xf32>
    %153 = arith.subf %147, %152 : vector<8x64xf32>
    %154 = arith.mulf %153, %153 : vector<8x64xf32>
    %cst_61 = arith.constant dense<0.000000e+00> : vector<8xf32>
    %155 = vector.multi_reduction <add>, %154, %cst_61 [1] : vector<8x64xf32> to vector<8xf32>
    %156 = vector.shape_cast %155 : vector<8xf32> to vector<8x1xf32>
    %cst_62 = arith.constant 6.400000e+01 : f32
    %157 = vector.broadcast %cst_62 : f32 to vector<8x1xf32>
    %158 = arith.divf %156, %157 : vector<8x1xf32>
    %159 = vector.broadcast %151 : vector<8x1xf32> to vector<8x64xf32>
    %160 = arith.subf %147, %159 : vector<8x64xf32>
    %cst_63 = arith.constant 9.99999974E-6 : f32
    %161 = vector.broadcast %cst_63 : f32 to vector<8x1xf32>
    %162 = arith.addf %158, %161 : vector<8x1xf32>
    %163 = math.rsqrt %162 : vector<8x1xf32>
    %164 = vector.broadcast %163 : vector<8x1xf32> to vector<8x64xf32>
    %165 = arith.mulf %160, %164 : vector<8x64xf32>
    %166 = vector.broadcast %13 : vector<1x64xf32> to vector<8x64xf32>
    %167 = arith.mulf %165, %166 : vector<8x64xf32>
    %168 = vector.broadcast %14 : vector<1x64xf32> to vector<8x64xf32>
    %169 = arith.addf %167, %168 : vector<8x64xf32>
    %cst_64 = arith.constant dense<0.000000e+00> : vector<8x64xf32>
    %170 = tpu.matmul %169, %5, %cst_64 {dimension_numbers = #tpu.dot_dimension_numbers<[1], [0], [0], [1], [0, 0, 1, 1], [], []>} : vector<8x64xf32>, vector<64x64xf32>, vector<8x64xf32> -> vector<8x64xf32>
    %171 = vector.broadcast %11 : vector<1x64xf32> to vector<8x64xf32>
    %172 = arith.addf %170, %171 : vector<8x64xf32>
    %cst_65 = arith.constant 0.000000e+00 : f32
    %173 = vector.broadcast %cst_65 : f32 to vector<8x64xf32>
    %174 = arith.maximumf %172, %173 : vector<8x64xf32>
    %cst_66 = arith.constant dense<0.000000e+00> : vector<8x64xf32>
    %175 = tpu.matmul %174, %6, %cst_66 {dimension_numbers = #tpu.dot_dimension_numbers<[1], [0], [0], [1], [0, 0, 1, 1], [], []>} : vector<8x64xf32>, vector<64x64xf32>, vector<8x64xf32> -> vector<8x64xf32>
    %176 = vector.broadcast %12 : vector<1x64xf32> to vector<8x64xf32>
    %177 = arith.addf %175, %176 : vector<8x64xf32>
    %178 = arith.addf %169, %177 : vector<8x64xf32>
    %cst_67 = arith.constant dense<0.000000e+00> : vector<8xf32>
    %179 = vector.multi_reduction <add>, %178, %cst_67 [1] : vector<8x64xf32> to vector<8xf32>
    %180 = vector.shape_cast %179 : vector<8xf32> to vector<8x1xf32>
    %cst_68 = arith.constant 6.400000e+01 : f32
    %181 = vector.broadcast %cst_68 : f32 to vector<8x1xf32>
    %182 = arith.divf %180, %181 : vector<8x1xf32>
    %183 = vector.broadcast %182 : vector<8x1xf32> to vector<8x64xf32>
    %184 = arith.subf %178, %183 : vector<8x64xf32>
    %185 = arith.mulf %184, %184 : vector<8x64xf32>
    %cst_69 = arith.constant dense<0.000000e+00> : vector<8xf32>
    %186 = vector.multi_reduction <add>, %185, %cst_69 [1] : vector<8x64xf32> to vector<8xf32>
    %187 = vector.shape_cast %186 : vector<8xf32> to vector<8x1xf32>
    %cst_70 = arith.constant 6.400000e+01 : f32
    %188 = vector.broadcast %cst_70 : f32 to vector<8x1xf32>
    %189 = arith.divf %187, %188 : vector<8x1xf32>
    %190 = vector.broadcast %182 : vector<8x1xf32> to vector<8x64xf32>
    %191 = arith.subf %178, %190 : vector<8x64xf32>
    %cst_71 = arith.constant 9.99999974E-6 : f32
    %192 = vector.broadcast %cst_71 : f32 to vector<8x1xf32>
    %193 = arith.addf %189, %192 : vector<8x1xf32>
    %194 = math.rsqrt %193 : vector<8x1xf32>
    %195 = vector.broadcast %194 : vector<8x1xf32> to vector<8x64xf32>
    %196 = arith.mulf %191, %195 : vector<8x64xf32>
    %197 = vector.broadcast %15 : vector<1x64xf32> to vector<8x64xf32>
    %198 = arith.mulf %196, %197 : vector<8x64xf32>
    %199 = vector.broadcast %16 : vector<1x64xf32> to vector<8x64xf32>
    %200 = arith.addf %198, %199 : vector<8x64xf32>
    %201 = tpu.concatenate %23, %200 in 0 : vector<8x64xf32>, vector<8x64xf32> -> vector<16x64xf32>
    %cst_72 = arith.constant dense<0.000000e+00> : vector<16x64xf32>
    %202 = tpu.matmul %2, %201, %cst_72 {dimension_numbers = #tpu.dot_dimension_numbers<[1], [0], [0], [1], [0, 0, 1, 1], [], []>} : vector<16x16xf32>, vector<16x64xf32>, vector<16x64xf32> -> vector<16x64xf32>
    %cst_73 = arith.constant dense<0.000000e+00> : vector<16x128xf32>
    %203 = tpu.matmul %202, %8, %cst_73 {dimension_numbers = #tpu.dot_dimension_numbers<[1], [0], [0], [1], [0, 0, 1, 1], [], []>} : vector<16x64xf32>, vector<64x128xf32>, vector<16x128xf32> -> vector<16x128xf32>
    %204 = vector.broadcast %18 : vector<1x128xf32> to vector<16x128xf32>
    %205 = arith.addf %203, %204 : vector<16x128xf32>
    %c0_74 = arith.constant 0 : index
    %c0_75 = arith.constant 0 : index
    %206 = vector.load %arg6[%c0_74, %c0_75] : memref<16x128xf32, #tpu.memory_space<vmem>>, vector<16x128xf32>
    tpu.vector_store %arg6[%c0_74, %c0_75], %205 {strides = array<i32>} : memref<16x128xf32, #tpu.memory_space<vmem>>, vector<16x128xf32>,
    %cst_76 = arith.constant dense<0xFF800000> : vector<16xf32>
    %207 = vector.multi_reduction <maximumf>, %205, %cst_76 [1] : vector<16x128xf32> to vector<16xf32>
    %208 = vector.shape_cast %207 : vector<16xf32> to vector<16x1xf32>
    %209 = vector.broadcast %208 : vector<16x1xf32> to vector<16x128xf32>
    %210 = arith.subf %205, %209 : vector<16x128xf32>
    %211 = math.exp %210 : vector<16x128xf32>
    %cst_77 = arith.constant dense<0.000000e+00> : vector<16xf32>
    %212 = vector.multi_reduction <add>, %211, %cst_77 [1] : vector<16x128xf32> to vector<16xf32>
    %213 = vector.shape_cast %212 : vector<16xf32> to vector<16x1xf32>
    %214 = math.log %213 : vector<16x1xf32>
    %215 = arith.addf %208, %214 : vector<16x1xf32>
    %cst_78 = arith.constant dense<0.000000e+00> : vector<16xf32>
    %216 = vector.multi_reduction <add>, %1, %cst_78 [1] : vector<16x128xf32> to vector<16xf32>
    %217 = vector.shape_cast %216 : vector<16xf32> to vector<16x1xf32>
    %218 = arith.mulf %217, %215 : vector<16x1xf32>
    %219 = vector.shape_cast %218 : vector<16x1xf32> to vector<1x16x1xf32>
    %cst_79 = arith.constant dense<0.000000e+00> : vector<1xf32>
    %220 = vector.multi_reduction <add>, %219, %cst_79 [1, 2] : vector<1x16x1xf32> to vector<1xf32>
    %221 = vector.shape_cast %220 : vector<1xf32> to vector<1x1x1xf32>
    %222 = vector.extract %221[0, 0, 0] : f32 from vector<1x1x1xf32>
    %223 = arith.mulf %1, %205 : vector<16x128xf32>
    %224 = vector.shape_cast %223 : vector<16x128xf32> to vector<1x16x128xf32>
    %cst_80 = arith.constant dense<0.000000e+00> : vector<1xf32>
    %225 = vector.multi_reduction <add>, %224, %cst_80 [1, 2] : vector<1x16x128xf32> to vector<1xf32>
    %226 = vector.shape_cast %225 : vector<1xf32> to vector<1x1x1xf32>
    %227 = vector.extract %226[0, 0, 0] : f32 from vector<1x1x1xf32>
    %228 = arith.subf %222, %227 : f32
    %cst_81 = arith.constant 5.000000e-01 : f32
    %229 = arith.mulf %cst_81, %60 : f32
    %230 = arith.addf %228, %229 : f32
    %c0_82 = arith.constant 0 : index
    %231 = memref.load %arg5[%c0_82] : memref<1xf32, #tpu.memory_space<smem>>
    memref.store %230, %arg5[%c0_82] : memref<1xf32, #tpu.memory_space<smem>>
    return
  }
}

</mosaic_0001>

<bundles_post_ra>
// kernel: i2srm_forward.1
= control target key start
LH: loop header
LB: loop body
LE: loop exit
PB: predicated region body
PF: predicated region fallthrough
CT: control target
= control target key end

     0   :  { %s2444_s0 = inlined_call_operand.vmem [shape: f32[128,32], index: 0, kind: input, shape index: {}]   ;;  %s2445_s1 = inlined_call_operand.vmem [shape: f32[48,128], index: 1, kind: input, shape index: {}]   ;;  %s2446_s2 = inlined_call_operand.vmem [shape: f32[8,64], index: 2, kind: input, shape index: {}]   ;;  %s2447_s3 = inlined_call_operand.vmem [shape: f32[384,192], index: 3, kind: input, shape index: {}]   ;;  %s2448_s4 = inlined_call_operand.vmem [shape: f32[14,192], index: 4, kind: input, shape index: {}]   ;;  %s2449_s5 = inlined_call_operand.hbm [shape: f32[1], index: 5, kind: output, shape index: {0}]   ;;  %s2450_s6 = inlined_call_operand.vmem [shape: f32[16,128], index: 6, kind: output, shape index: {1}]  }
   0x1   :  { %v95_v0 = vld [vmem:[%s2444_s0] sm:$0xff]  ;;  %v96_v1 = vld [vmem:[%s2444_s0 + $0x8] sm:$0xff]  ;;  %v97_v2 = vld [vmem:[%s2444_s0 + $0x10] sm:$0xff] }
   0x2   :  { %v1816_v3 = vpack.c.bf16 %v96_v1, %v95_v0  ;;  %v98_v4 = vld [vmem:[%s2444_s0 + $0x18] sm:$0xff]  ;;  %v99_v6 = vld [vmem:[%s2444_s0 + $0x20] sm:$0xff]  ;;  %v100_v7 = vld [vmem:[%s2444_s0 + $0x28] sm:$0xff] }
   0x3   :  { %v1820_v5 = vpack.c.bf16 %v98_v4, %v97_v2  ;;  %v1824_v8 = vpack.c.bf16 %v100_v7, %v99_v6  ;;  %v23_v9 = vld [vmem:[%s2445_s1] sm:$0xff]  ;;  %v101_v10 = vld [vmem:[%s2444_s0 + $0x30] sm:$0xff]  ;;  %v102_v11 = vld [vmem:[%s2444_s0 + $0x38] sm:$0xff] }
   0x4   :  { %1817 = vmatprep.subr.bf16.mxu0 %v1816_v3  ;;  %1671 = vmatprep.mubr.f32.mxu0 %v23_v9 }
   0x5   :  { %1819 = vmatpush3.bf16.msra.mxu0 %v1816_v3 }
   0x6   :  { %1821 = vmatprep.subr.bf16.mxu0 %v1820_v5 }
   0x7   :  { %12 = vsyncpa [#allocation3], 0  ;;  %v1828_v12 = vpack.c.bf16 %v102_v11, %v101_v10  ;;  %v103_v13 = vld [vmem:[%s2444_s0 + $0x40] sm:$0xff]  ;;  %v104_v14 = vld [vmem:[%s2444_s0 + $0x48] sm:$0xff]  ;;  %v2000_v29 = vmov 0.0|0.0   ;;  %vm2001_vm0 = vmmov 0   ;;  %v307_v7 = vlaneseq }
   0x8   :  { %v1832_v15 = vpack.c.bf16 %v104_v14, %v103_v13  ;;  %v105_v16 = vld [vmem:[%s2444_s0 + $0x50] sm:$0xff]  ;;  %v106_v17 = vld [vmem:[%s2444_s0 + $0x58] sm:$0xff]  ;;  %v107_v19 = vld [vmem:[%s2444_s0 + $0x60] sm:$0xff]  ;;  %1848 = vmatprep.subr.bf16.mxu1 %v2000_v29  ;;  %v2002_v32 = vmov 0.0   ;;  %vm193_vm1 = vcmask 523264   ;;  %s2003_s8 = smov 32  }
   0x9   :  { %1823 = vmatpush3.bf16.msra.mxu0 %v1820_v5  ;;  %v1836_v18 = vpack.c.bf16 %v106_v17, %v105_v16  ;;  %v108_v20 = vld [vmem:[%s2444_s0 + $0x68] sm:$0xff]  ;;  %v109_v22 = vld [vmem:[%s2444_s0 + $0x70] sm:$0xff]  ;;  %v110_v23 = vld [vmem:[%s2444_s0 + $0x78] sm:$0xff]  ;;  %1690 = vmatprep.mubr.msk.f32.mxu1 %vm2001_vm0, %v2002_v32  ;;  %vm190_vm2 = vcmask 261120   ;;  %s2004_s18 = smov 64   ;;  %vm472_vm3 = vcmask 64512  }
   0xa   :  { %1825 = vmatprep.subr.bf16.mxu0 %v1824_v8  ;;  %v1840_v21 = vpack.c.bf16 %v108_v20, %v107_v19  ;;  %v1844_v24 = vpack.c.bf16 %v110_v23, %v109_v22  ;;  %v24_v25 = vld [vmem:[%s2445_s1 + $0x8] sm:$0xff]  ;;  %v69_v26 = vld [vmem:[%s2447_s3 + $0x200] sm:$0xff]  ;;  %v70_v27 = vld [vmem:[%s2447_s3 + $0x210] sm:$0xff]  ;;  %vm1296_vm4 = vcmask 130048   ;;  %vm1487_vm5 = vcmask 7168   ;;  %s1988_s14 = scalar_lea.hbm %s2449_s5, 16 }
   0xb   :  { %v71_v28 = vld [vmem:[%s2447_s3 + $0x220] sm:$0xff]  ;;  %v1849_v30 = vpack.c.bf16 %v70_v27, %v69_v26  ;;  %v72_v31 = vld [vmem:[%s2447_s3 + $0x230] sm:$0xff]  ;;  %v30_v39 = vld [vmem:[%s2447_s3 + $0x8] sm:$0xff]  ;;  %p1989_p0 = scmp.ne.s32.totalorder %s2449_s5, %s1988_s14  ;;  %p1992_p1 = scmp.lt.u32.totalorder %s1988_s14, %s2449_s5 }
   0xc   :  { %v1852_v33 = vpack.c.bf16 %v72_v31, %v71_v28  ;;  %v73_v34 = vld [vmem:[%s2447_s3 + $0x240] sm:$0xff]  ;;  %v74_v35 = vld [vmem:[%s2447_s3 + $0x250] sm:$0xff]  ;;  %v32_v40 = vld [vmem:[%s2447_s3 + $0x18] sm:$0xff] }
   0xd   :  { %1827 = vmatpush3.bf16.msra.mxu0 %v1824_v8  ;;  %1850 = vmatpush3.bf16.msra.mxu1 %v1849_v30  ;;  %v1855_v36 = vpack.c.bf16 %v74_v35, %v73_v34  ;;  %v75_v37 = vld [vmem:[%s2447_s3 + $0x260] sm:$0xff]  ;;  %v76_v38 = vld [vmem:[%s2447_s3 + $0x270] sm:$0xff]  ;;  %v1860_v42 = vpack.c.bf16 %v32_v40, %v30_v39  ;;  %v34_v45 = vld [vmem:[%s2447_s3 + $0x28] sm:$0xff]  ;;  %v308_v8 = vshrl.u32 %v307_v7, 7  ;;  %p1994_p2 = pnand %p1992_p1, %p1989_p0 }
   0xe   :  { %1829 = vmatprep.subr.bf16.mxu0 %v1828_v12  ;;  %1851 = vmatprep.subr.bf16.mxu1 %v2000_v29  ;;  %v1858_v41 = vpack.c.bf16 %v76_v38, %v75_v37  ;;  %v29_v43 = vld [vmem:[%s2447_s3] sm:$0xff]  ;;  %v31_v44 = vld [vmem:[%s2447_s3 + $0x10] sm:$0xff]  ;;  %v36_v46 = vld [vmem:[%s2447_s3 + $0x38] sm:$0xff] }
   0xf   :  { %v192_v47 = vld [vmem:[%s2446_s2] sm:$0xff]  ;;  %v1862_v48 = vpack.c.bf16 %v31_v44, %v29_v43  ;;  %v1864_v49 = vpack.c.bf16 %v36_v46, %v34_v45  ;;  %v35_v51 = vld [vmem:[%s2447_s3 + $0x30] sm:$0xff]  ;;  %v38_v52 = vld [vmem:[%s2447_s3 + $0x48] sm:$0xff]  ;;  %v309_v9 = vsub.s32 0, %v308_v8  ;;  %v313_v11 = vsub.s32 1, %v308_v8 }
  0x10   :  { %v33_v50 = vld [vmem:[%s2447_s3 + $0x20] sm:$0xff]  ;;  %v40_v53 = vld [vmem:[%s2447_s3 + $0x58] sm:$0xff]  ;;  %v39_v57 = vld [vmem:[%s2447_s3 + $0x50] sm:$0xff] }
  0x11   :  { %1831 = vmatpush3.bf16.msra.mxu0 %v1828_v12  ;;  %1853 = vmatpush3.bf16.msra.mxu1 %v1852_v33  ;;  %v1866_v54 = vpack.c.bf16 %v35_v51, %v33_v50  ;;  %v1868_v55 = vpack.c.bf16 %v40_v53, %v38_v52  ;;  %v37_v56 = vld [vmem:[%s2447_s3 + $0x40] sm:$0xff]  ;;  %v42_v58 = vld [vmem:[%s2447_s3 + $0x68] sm:$0xff]  ;;  %v44_v59 = vld [vmem:[%s2447_s3 + $0x78] sm:$0xff] }
  0x12   :  { %1833 = vmatprep.subr.bf16.mxu0 %v1832_v15  ;;  %1854 = vmatprep.subr.bf16.mxu1 %v2000_v29  ;;  %v1870_v60 = vpack.c.bf16 %v39_v57, %v37_v56  ;;  %v1872_v61 = vpack.c.bf16 %v44_v59, %v42_v58  ;;  %v41_v62 = vld [vmem:[%s2447_s3 + $0x60] sm:$0xff]  ;;  %v43_v63 = vld [vmem:[%s2447_s3 + $0x70] sm:$0xff] }
  0x13   :  { %v1874_v0 = vpack.c.bf16 %v43_v63, %v41_v62  ;;  %v85_v10 = vld [vmem:[%s2448_s4] ss:$8 sm:$0x3]  ;;  %v391_v16 = vld [vmem:[%s2448_s4 + $0x12] ss:$0 sm:$0xff] }
  0x14   :  { %v310_v12 = vrot.slane %v85_v10, %v309_v9  ;;  %v314_v13 = vrot.slane %v85_v10, %v313_v11  ;;  %v719_v19 = vld [vmem:[%s2448_s4 + $0x14] ss:$0 sm:$0xff]  ;;  %v881_v20 = vld [vmem:[%s2448_s4 + $0x15] ss:$0 sm:$0xff]  ;;  %v45_v7 = vld [vmem:[%s2447_s3 + $0x80] sm:$0xff] }
  0x15   :  { %1835 = vmatpush3.bf16.msra.mxu0 %v1832_v15  ;;  %1856 = vmatpush3.bf16.msra.mxu1 %v1855_v36  ;;  %v485_v15 = vld [vmem:[%s2448_s4 + $0x13] ss:$0 sm:$0xff]  ;;  %v47_v9 = vld [vmem:[%s2447_s3 + $0xa0] sm:$0xff] }
  0x16   :  { %1837 = vmatprep.subr.bf16.mxu0 %v1836_v18  ;;  %1857 = vmatprep.subr.bf16.mxu1 %v2000_v29  ;;  %v46_v8 = vld [vmem:[%s2447_s3 + $0x90] sm:$0xff] }
  0x17   :  { %v1877_v10 = vpack.c.bf16 %v46_v8, %v45_v7  ;;  %v48_v11 = vld [vmem:[%s2447_s3 + $0xb0] sm:$0xff]  ;;  %v89_v8 = vld [vmem:[%s2448_s4 + $0x4] ss:$0 sm:$0xff] }
  0x19   :  { %1839 = vmatpush3.bf16.msra.mxu0 %v1836_v18  ;;  %1859 = vmatpush3.bf16.msra.mxu1 %v1858_v41 }
  0x1a   :  { %1841 = vmatprep.subr.bf16.mxu0 %v1840_v21  ;;  %1861 = vmatprep.subr.bf16.mxu1 %v1860_v42 }
  0x1c   :  { %1691 = vmatmul.mubr.msk.f32.vlgmr.msra.gmra.mrb[0].mxu1 %vm193_vm1, %v192_v47 }
  0x1d   :  { %1843 = vmatpush3.bf16.msra.mxu0 %v1840_v21  ;;  %1863 = vmatpush1.bf16.msra.mxu1 %v1862_v48 }
  0x1e   :  { %1845 = vmatprep.subr.bf16.mxu0 %v1844_v24  ;;  %384 = vmatprep.mubr.f32.mxu1 %v2002_v32 }
  0x1f   :  { %1865 = vmatprep.subr.bf16.mxu1 %v1864_v49 }
  0x21   :  { %1847 = vmatpush3.bf16.msra.mxu0 %v1844_v24  ;;  %1867 = vmatpush1.bf16.msra.mxu1 %v1866_v54 }
  0x22   :  { %1703 = vmatprep.subr.mxu0 %v2002_v32  ;;  %1869 = vmatprep.subr.bf16.mxu1 %v1868_v55 }
  0x24   :  { %1672 = vmatmul.mubr.f32.vlgmr.msra.gmra.mrb[0].mxu0 %v24_v25 }
  0x25   :  { %1705 = vmatprep.mubr.msk.f32.mxu0 %vm2001_vm0, %v2002_v32  ;;  %1871 = vmatpush1.bf16.msra.mxu1 %v1870_v60 }
  0x26   :  { %1873 = vmatprep.subr.bf16.mxu1 %v1872_v61 }
  0x29   :  { %1875 = vmatpush1.bf16.msra.mxu1 %v1874_v0 }
  0x2a   :  { %1693 = vmatprep.subr.mxu1 %v2002_v32 }
  0xef   :  { %v2182_v3 = vpop.f32.mrb[0].mxu1 }
  0xf0   :  { %v1692_v4 = vpop.f32.mrb[1].mxu1 }
  0xf7   :  { %v1673_v1 = vpop.f32.mrb[0].mxu0 }
  0xf8   :  { %187 = vrot.lane.b32.xlu0 %v1673_v1, %s2003_s8  ;;  %v177_v2 = vpop.f32.mrb[1].mxu0 }
 0x16a   :  { %v188_v5 = vpop.permute.xlu0 %187 }
 0x16b   :  { %v2184_v6 = vsel %vm190_vm2, %v177_v2, %v188_v5 }
 0x16c   :  { %1535 = vmatmul.mubr.msk.f32.vlgmr.msra.gmra.mrb[2].mxu1 %vm193_vm1, %v2184_v6 }
 0x16d   :  { %1695 = vmatprep.mubr.msk.f32.mxu1 %vm2001_vm0, %v2002_v32 }
 0x23f   :  { %v386_v14 = vpop.f32.mrb[2].mxu1 }
 0x240   :  { %v387_v17 = vadd.f32 %v386_v14, %v310_v12  ;;  %v388_v18 = vpop.f32.mrb[3].mxu1  ;;  %v1880_v12 = vpack.c.bf16 %v48_v11, %v47_v9  ;;  %v50_v14 = vld [vmem:[%s2447_s3 + $0xd0] sm:$0xff] }
 0x241   :  { %v389_v21 = vadd.f32 %v388_v18, %v314_v13  ;;  %v49_v13 = vld [vmem:[%s2447_s3 + $0xc0] sm:$0xff] }
 0x242   :  { %394 = vrot.lane.b32.xlu0 %v387_v17, %s2004_s18  ;;  %v486_v22 = vmul.f32 %v485_v15, %v387_v17  ;;  %v392_v28 = vmul.f32 %v391_v16, %v387_v17  ;;  %v720_v30 = vmul.f32 %v719_v19, %v387_v17  ;;  %v882_v31 = vmul.f32 %v881_v20, %v387_v17  ;;  %v52_v17 = vld [vmem:[%s2447_s3 + $0xf0] sm:$0xff] }
 0x243   :  { %v572_v23 = vmul.f32 %v485_v15, %v389_v21  ;;  %v2205_v24 = vmul.f32 %v391_v16, %v389_v21  ;;  %v2207_v25 = vmul.f32 %v719_v19, %v389_v21  ;;  %v2209_v26 = vmul.f32 %v881_v20, %v389_v21  ;;  %v51_v16 = vld [vmem:[%s2447_s3 + $0xe0] sm:$0xff] }
 0x244   :  { %v1883_v15 = vpack.c.bf16 %v50_v14, %v49_v13  ;;  %v1886_v18 = vpack.c.bf16 %v52_v17, %v51_v16  ;;  %v68_v13 = vld [vmem:[%s2447_s3 + $0x1f0] sm:$0xff] }
 0x245   :  { %1704 = vmatpush3.msra.mxu0 %v572_v23 }
 0x246   :  { %1708 = vmatprep.subr.mxu0 %v2002_v32 }
 0x2b4   :  { %v395_v27 = vpop.permute.xlu0 %394 }
 0x2b5   :  { %1694 = vmatpush3.xpose.msk.msra.mxu1 %vm193_vm1, %v395_v27 }
 0x2b6   :  { %1698 = vmatprep.subr.mxu1 %v2002_v32 }
 0x2b8   :  { %1696 = vmatmul.mubr.msk.f32.vlgmr.msra.gmra.mrb[4].mxu1 %vm193_vm1, %v392_v28 }
 0x2b9   :  { %1699 = vmatpush3.xpose.msk.msra.mxu1 %vm193_vm1, %v395_v27  ;;  %1700 = vmatprep.mubr.msk.f32.mxu1 %vm2001_vm0, %v2002_v32 }
 0x2ba   :  { %1713 = vmatprep.subr.mxu1 %v2002_v32 }
 0x2bc   :  { %1701 = vmatmul.mubr.msk.f32.vlgmr.msra.gmra.mrb[6].mxu1 %vm193_vm1, %v486_v22 }
 0x2bd   :  { %1714 = vmatpush3.xpose.msk.msra.mxu1 %vm193_vm1, %v395_v27  ;;  %1715 = vmatprep.mubr.msk.f32.mxu1 %vm2001_vm0, %v2002_v32 }
 0x2be   :  { %1723 = vmatprep.subr.mxu1 %v2002_v32 }
 0x2c0   :  { %1716 = vmatmul.mubr.msk.f32.vlgmr.msra.gmra.mrb[8].mxu1 %vm193_vm1, %v720_v30 }
 0x2c1   :  { %1724 = vmatpush3.xpose.msk.msra.mxu1 %vm193_vm1, %v395_v27  ;;  %1725 = vmatprep.mubr.msk.f32.mxu1 %vm2001_vm0, %v2002_v32 }
 0x2c2   :  { %1876 = vmatprep.subr.bf16.mxu1 %v2000_v29 }
 0x2c4   :  { %1726 = vmatmul.mubr.msk.f32.vlgmr.msra.gmra.mrb[10].mxu1 %vm193_vm1, %v882_v31 }
 0x2c5   :  { %1749 = vmatprep.mubr.msk.f32.mxu1 %vm2001_vm0, %v2002_v32  ;;  %1878 = vmatpush3.bf16.msra.mxu1 %v1877_v10  ;;  %v90_v10 = vld [vmem:[%s2448_s4 + $0x5] ss:$0 sm:$0xff] }
 0x2c6   :  { %1879 = vmatprep.subr.bf16.mxu1 %v2000_v29 }
 0x2c9   :  { %1881 = vmatpush3.bf16.msra.mxu1 %v1880_v12 }
 0x2ca   :  { %1882 = vmatprep.subr.bf16.mxu1 %v2000_v29 }
 0x2cd   :  { %1884 = vmatpush3.bf16.msra.mxu1 %v1883_v15  ;;  %v87_v15 = vld [vmem:[%s2448_s4 + $0x2] ss:$0 sm:$0xff] }
 0x2ce   :  { %1885 = vmatprep.subr.bf16.mxu1 %v2000_v29 }
 0x2d1   :  { %1887 = vmatpush3.bf16.msra.mxu1 %v1886_v18 }
 0x2d2   :  { %1900 = vmatprep.subr.bf16.mxu1 %v2000_v29 }
 0x38b   :  { %v467_v33 = vpop.f32.mrb[4].mxu1 }
 0x38c   :  { %v1697_v34 = vpop.f32.mrb[5].mxu1  ;;  %v471_v38 = vmul.f32 0.25, %v467_v33 }
 0x38e   :  { %v473_v43 = vsel %vm472_vm3, %v471_v38, -inf }
 0x38f   :  { %v556_v35 = vpop.f32.mrb[6].mxu1 }
 0x390   :  { %v560_v36 = vmul.f32 0.25, %v556_v35  ;;  %v1702_v37 = vpop.f32.mrb[7].mxu1 }
 0x392   :  { %v561_v39 = vsel %vm472_vm3, %v560_v36, -inf }
 0x393   :  { %562 = vmax.xlane.f32.xlu1 %v561_v39  ;;  %v790_v40 = vpop.f32.mrb[8].mxu1 }
 0x394   :  { %v794_v41 = vmul.f32 0.25, %v790_v40  ;;  %v1717_v42 = vpop.f32.mrb[9].mxu1 }
 0x396   :  { %v795_v44 = vsel %vm472_vm3, %v794_v41, -inf }
 0x397   :  { %474 = vmax.xlane.f32.xlu1 %v473_v43  ;;  %796 = vmax.xlane.f32.xlu0 %v795_v44  ;;  %v952_v45 = vpop.f32.mrb[10].mxu1 }
 0x398   :  { %v956_v46 = vmul.f32 0.25, %v952_v45  ;;  %v1727_v47 = vpop.f32.mrb[11].mxu1 }
 0x39a   :  { %v957_v48 = vsel %vm472_vm3, %v956_v46, -inf }
 0x39b   :  { %958 = vmax.xlane.f32.xlu1 %v957_v48  ;;  %v55_v48 = vld [vmem:[%s2447_s3 + $0x120] sm:$0xff] }
 0x420   :  { %v563_v49 = vpop.xlane.xlu1 %562 }
 0x421   :  { %v564_v50 = vsub.f32 %v560_v36, %v563_v49  ;;  %v56_v49 = vld [vmem:[%s2447_s3 + $0x130] sm:$0xff] }
 0x423   :  { %v565_v51 = vmul.f32 1.442695, %v564_v50  ;;  %v1892_v50 = vpack.c.bf16 %v56_v49, %v55_v48  ;;  %v79_v49 = vld [vmem:[%s2447_s3 + $0x2a0] sm:$0xff] }
 0x424   :  { %v475_v52 = vpop.xlane.xlu1 %474  ;;  %v797_v53 = vpop.xlane.xlu0 %796 }
 0x425   :  { %1950 = vpow2.f32 %v565_v51  ;;  %v476_v54 = vsub.f32 %v471_v38, %v475_v52  ;;  %v798_v55 = vsub.f32 %v794_v41, %v797_v53  ;;  %v57_v51 = vld [vmem:[%s2447_s3 + $0x140] sm:$0xff]  ;;  %v58_v52 = vld [vmem:[%s2447_s3 + $0x150] sm:$0xff] }
 0x426   :  { %v1895_v53 = vpack.c.bf16 %v58_v52, %v57_v51  ;;  %v28_v51 = vld [vmem:[%s2445_s1 + $0x28] sm:$0xff] }
 0x427   :  { %v477_v56 = vmul.f32 1.442695, %v476_v54  ;;  %v799_v57 = vmul.f32 1.442695, %v798_v55  ;;  %v59_v54 = vld [vmem:[%s2447_s3 + $0x160] sm:$0xff]  ;;  %v60_v55 = vld [vmem:[%s2447_s3 + $0x170] sm:$0xff] }
 0x428   :  { %v959_v58 = vpop.xlane.xlu1 %958 }
 0x429   :  { %1952 = vpow2.f32 %v477_v56  ;;  %v960_v59 = vsub.f32 %v956_v46, %v959_v58  ;;  %v54_v46 = vld [vmem:[%s2447_s3 + $0x110] sm:$0xff]  ;;  %v1898_v56 = vpack.c.bf16 %v60_v55, %v59_v54 }
 0x42a   :  { %1954 = vpow2.f32 %v799_v57  ;;  %v61_v57 = vld [vmem:[%s2447_s3 + $0x180] sm:$0xff]  ;;  %v62_v58 = vld [vmem:[%s2447_s3 + $0x190] sm:$0xff] }
 0x42b   :  { %v961_v60 = vmul.f32 1.442695, %v960_v59  ;;  %v63_v59 = vld [vmem:[%s2447_s3 + $0x1a0] sm:$0xff]  ;;  %v82_v54 = vld [vmem:[%s2447_s3 + $0x2d0] sm:$0xff] }
 0x42d   :  { %1956 = vpow2.f32 %v961_v60  ;;  %v1901_v60 = vpack.c.bf16 %v62_v58, %v61_v57  ;;  %v84_v57 = vld [vmem:[%s2447_s3 + $0x2f0] sm:$0xff] }
 0x42f   :  { %v1951_v61 = vpop.eup %1950 }
 0x430   :  { %v567_v62 = vsel %vm472_vm3, %v1951_v61, 0.0 }
 0x431   :  { %568 = vadd.xlane.f32.xlu1 %v567_v62 }
 0x433   :  { %v1953_v63 = vpop.eup %1952 }
 0x434   :  { %v479_v0 = vsel %vm472_vm3, %v1953_v63, 0.0  ;;  %v1955_v1 = vpop.eup %1954 }
 0x435   :  { %480 = vadd.xlane.f32.xlu1 %v479_v0  ;;  %v801_v2 = vsel %vm472_vm3, %v1955_v1, 0.0  ;;  %v66_v0 = vld [vmem:[%s2447_s3 + $0x1d0] sm:$0xff] }
 0x437   :  { %v1957_v4 = vpop.eup %1956 }
 0x438   :  { %v963_v5 = vsel %vm472_vm3, %v1957_v4, 0.0 }
 0x439   :  { %802 = vadd.xlane.f32.xlu1 %v801_v2 }
 0x43d   :  { %964 = vadd.xlane.f32.xlu1 %v963_v5 }
 0x4be   :  { %v569_v19 = vpop.xlane.xlu1 %568 }
 0x4bf   :  { %1958 = vrcp.f32 %v569_v19 }
 0x4c2   :  { %v481_v20 = vpop.xlane.xlu1 %480 }
 0x4c3   :  { %1960 = vrcp.f32 %v481_v20  ;;  %v88_v20 = vld [vmem:[%s2448_s4 + $0x3] ss:$0 sm:$0xff] }
 0x4c6   :  { %v803_v23 = vpop.xlane.xlu1 %802 }
 0x4c7   :  { %1962 = vrcp.f32 %v803_v23 }
 0x4c9   :  { %v1959_v21 = vpop.eup %1958 }
 0x4ca   :  { %v571_v22 = vmul.f32 %v1959_v21, %v1951_v61  ;;  %v965_v30 = vpop.xlane.xlu1 %964  ;;  %v64_v61 = vld [vmem:[%s2447_s3 + $0x1b0] sm:$0xff] }
 0x4cb   :  { %1964 = vrcp.f32 %v965_v30  ;;  %v1904_v62 = vpack.c.bf16 %v64_v61, %v63_v59 }
 0x4cc   :  { %1706 = vmatmul.mubr.msk.f32.vlgmr.msra.gmra.mrb[2].mxu0 %vm472_vm3, %v571_v22 }
 0x4cd   :  { %1709 = vmatpush3.msra.mxu0 %v2205_v24  ;;  %1710 = vmatprep.mubr.msk.f32.mxu0 %vm2001_vm0, %v2002_v32  ;;  %v1961_v27 = vpop.eup %1960 }
 0x4ce   :  { %1718 = vmatprep.subr.mxu0 %v2002_v32  ;;  %v483_v28 = vmul.f32 %v1961_v27, %v1953_v63  ;;  %v65_v63 = vld [vmem:[%s2447_s3 + $0x1c0] sm:$0xff]  ;;  %v93_v27 = vld [vmem:[%s2448_s4 + $0x10] ss:$0 sm:$0xff] }
 0x4cf   :  { %v264_v30 = vadd.f32 %v2182_v3, %v93_v27  ;;  %v27_v3 = vld [vmem:[%s2445_s1 + $0x20] sm:$0xff] }
 0x4d1   :  { %v1963_v31 = vpop.eup %1962 }
 0x4d2   :  { %v805_v24 = vmul.f32 %v1963_v31, %v1955_v1  ;;  %v1907_v1 = vpack.c.bf16 %v66_v0, %v65_v63 }
 0x4d4   :  { %1711 = vmatmul.mubr.msk.f32.vlgmr.msra.gmra.mrb[2].mxu0 %vm472_vm3, %v483_v28 }
 0x4d5   :  { %1719 = vmatpush3.msra.mxu0 %v2207_v25  ;;  %1720 = vmatprep.mubr.msk.f32.mxu0 %vm2001_vm0, %v2002_v32  ;;  %v1965_v33 = vpop.eup %1964 }
 0x4d6   :  { %1728 = vmatprep.subr.mxu0 %v2002_v32  ;;  %v967_v34 = vmul.f32 %v1965_v33, %v1957_v4 }
 0x4dc   :  { %1721 = vmatmul.mubr.msk.f32.vlgmr.msra.gmra.mrb[2].mxu0 %vm472_vm3, %v805_v24  ;;  %v267_v24 = vsel %vm193_vm1, %v264_v30, -inf }
 0x4dd   :  { %1729 = vmatpush3.msra.mxu0 %v2209_v26  ;;  %1730 = vmatprep.mubr.msk.f32.mxu0 %vm2001_vm0, %v2002_v32  ;;  %v86_v26 = vld [vmem:[%s2448_s4 + $0x1] ss:$0 sm:$0xff] }
 0x4de   :  { %1888 = vmatprep.subr.bf16.mxu0 %v2000_v29 }
 0x4e4   :  { %1731 = vmatmul.mubr.msk.f32.vlgmr.msra.gmra.mrb[2].mxu0 %vm472_vm3, %v967_v34 }
 0x4e5   :  { %1768 = vmatprep.mubr.msk.f32.mxu0 %vm2001_vm0, %v2002_v32 }
 0x5b7   :  { %v1038_v25 = vpop.f32.mrb[2].mxu0 }
 0x5b8   :  { %v1732_v35 = vpop.f32.mrb[3].mxu0  ;;  %1750 = vmatmul.mubr.msk.f32.vlgmr.msra.gmra.mrb[12].mxu1 %vm193_vm1, %v1038_v25 }
 0x5b9   :  { %1787 = vmatprep.mubr.msk.f32.mxu1 %vm2001_vm0, %v2002_v32  ;;  %v53_v32 = vld [vmem:[%s2447_s3 + $0x100] sm:$0xff]  ;;  %1902 = vmatpush3.bf16.msra.mxu1 %v1901_v60 }
 0x5ba   :  { %v1889_v47 = vpack.c.bf16 %v54_v46, %v53_v32  ;;  %1903 = vmatprep.subr.bf16.mxu1 %v2000_v29  ;;  %v78_v32 = vld [vmem:[%s2447_s3 + $0x290] sm:$0xff] }
 0x5bc   :  { %1890 = vmatpush3.bf16.msra.mxu0 %v1889_v47 }
 0x5bd   :  { %1891 = vmatprep.subr.bf16.mxu0 %v2000_v29  ;;  %1905 = vmatpush3.bf16.msra.mxu1 %v1904_v62 }
 0x5be   :  { %1906 = vmatprep.subr.bf16.mxu1 %v2000_v29 }
 0x5c0   :  { %1893 = vmatpush3.bf16.msra.mxu0 %v1892_v50  ;;  %v80_v50 = vld [vmem:[%s2447_s3 + $0x2b0] sm:$0xff] }
 0x5c1   :  { %1894 = vmatprep.subr.bf16.mxu0 %v2000_v29  ;;  %1908 = vmatpush3.bf16.msra.mxu1 %v1907_v1  ;;  %v1920_v52 = vpack.c.bf16 %v80_v50, %v79_v49 }
 0x5c2   :  { %1909 = vmatprep.subr.bf16.mxu1 %v2000_v29 }
 0x5c4   :  { %1896 = vmatpush3.bf16.msra.mxu0 %v1895_v53  ;;  %v81_v53 = vld [vmem:[%s2447_s3 + $0x2c0] sm:$0xff] }
 0x5c5   :  { %1897 = vmatprep.subr.bf16.mxu0 %v2000_v29  ;;  %v67_v29 = vld [vmem:[%s2447_s3 + $0x1e0] sm:$0xff]  ;;  %v1924_v55 = vpack.c.bf16 %v82_v54, %v81_v53 }
 0x5c6   :  { %v1910_v14 = vpack.c.bf16 %v68_v13, %v67_v29 }
 0x5c8   :  { %1899 = vmatpush3.bf16.msra.mxu0 %v1898_v56  ;;  %1911 = vmatpush3.bf16.msra.mxu1 %v1910_v14  ;;  %v83_v56 = vld [vmem:[%s2447_s3 + $0x2e0] sm:$0xff] }
 0x5c9   :  { %v1928_v58 = vpack.c.bf16 %v84_v57, %v83_v56 }
 0x68b   :  { %v1112_v36 = vpop.f32.mrb[12].mxu1 }
 0x68c   :  { %v1113_v37 = vadd.f32 %v1112_v36, %v86_v26  ;;  %v1751_v38 = vpop.f32.mrb[13].mxu1  ;;  %v279_v36 = vsel %vm193_vm1, %v2184_v6, -inf }
 0x68e   :  { %v1116_v39 = vadd.f32 %v1113_v37, %v2184_v6 }
 0x690   :  { %v1117_v40 = vsel %vm193_vm1, %v1116_v39, 0.0 }
 0x691   :  { %1118 = vadd.xlane.f32.xlu1 %v1117_v40 }
 0x71e   :  { %v1119_v41 = vpop.xlane.xlu1 %1118 }
 0x71f   :  { %v1121_v42 = vmul.f32 0.015625, %v1119_v41  ;;  %v91_v41 = vld [vmem:[%s2448_s4 + $0x6] ss:$0 sm:$0xff] }
 0x721   :  { %v1122_v43 = vsub.f32 %v1116_v39, %v1121_v42 }
 0x723   :  { %v1123_v44 = vmul.f32 %v1122_v43, %v1122_v43 }
 0x725   :  { %v1124_v45 = vsel %vm193_vm1, %v1123_v44, 0.0 }
 0x726   :  { %1125 = vadd.xlane.f32.xlu1 %v1124_v45  ;;  %v77_v45 = vld [vmem:[%s2447_s3 + $0x280] sm:$0xff] }
 0x727   :  { %v1916_v48 = vpack.c.bf16 %v78_v32, %v77_v45 }
 0x7b3   :  { %v1126_v2 = vpop.xlane.xlu1 %1125 }
 0x7b4   :  { %v1127_v4 = vmul.f32 0.015625, %v1126_v2 }
 0x7b6   :  { %v1128_v5 = vadd.f32 1e-05, %v1127_v4  ;;  %v94_v4 = vld [vmem:[%s2448_s4 + $0x11] ss:$0 sm:$0xff] }
 0x7b8   :  { %1966 = vrsqrt.f32 %v1128_v5 }
 0x7c2   :  { %v1967_v7 = vpop.eup %1966 }
 0x7c3   :  { %v1130_v9 = vmul.f32 %v1967_v7, %v1122_v43  ;;  %v92_v43 = vld [vmem:[%s2448_s4 + $0x7] ss:$0 sm:$0xff] }
 0x7c5   :  { %v1131_v11 = vmul.f32 %v1130_v9, %v89_v8 }
 0x7c7   :  { %v1132_v12 = vadd.f32 %v1131_v11, %v90_v10 }
 0x7c9   :  { %1769 = vmatmul.mubr.msk.f32.vlgmr.msra.gmra.mrb[4].mxu0 %vm193_vm1, %v1132_v12 }
 0x7ca   :  { %1794 = vmatprep.mubr.msk.f32.mxu0 %vm1296_vm4, %v27_v3 }
 0x89c   :  { %v1202_v16 = vpop.f32.mrb[4].mxu0 }
 0x89d   :  { %v1203_v17 = vadd.f32 %v1202_v16, %v87_v15  ;;  %v1770_v18 = vpop.f32.mrb[5].mxu0 }
 0x89f   :  { %v1206_v19 = vmax.f32 %v1203_v17, 0.0 }
 0x8a1   :  { %1788 = vmatmul.mubr.msk.f32.vlgmr.msra.gmra.mrb[14].mxu1 %vm193_vm1, %v1206_v19 }
 0x974   :  { %v1276_v21 = vpop.f32.mrb[14].mxu1 }
 0x975   :  { %v1277_v22 = vadd.f32 %v1276_v21, %v88_v20  ;;  %v1789_v23 = vpop.f32.mrb[15].mxu1 }
 0x977   :  { %v1280_v28 = vadd.f32 %v1277_v22, %v1132_v12 }
 0x979   :  { %v1281_v31 = vsel %vm193_vm1, %v1280_v28, 0.0 }
 0x97a   :  { %1282 = vadd.xlane.f32.xlu1 %v1281_v31  ;;  %v25_v31 = vld [vmem:[%s2445_s1 + $0x10] sm:$0xff] }
 0x97e   :  { %268 = vmax.xlane.f32.xlu1 %v267_v24 }
 0xa07   :  { %v1283_v33 = vpop.xlane.xlu1 %1282 }
 0xa08   :  { %v1284_v34 = vmul.f32 0.015625, %v1283_v33 }
 0xa0a   :  { %v1285_v25 = vsub.f32 %v1280_v28, %v1284_v34  ;;  %v26_v28 = vld [vmem:[%s2445_s1 + $0x18] sm:$0xff] }
 0xa0b   :  { %v269_v62 = vpop.xlane.xlu1 %268 }
 0xa0c   :  { %v1286_v35 = vmul.f32 %v1285_v25, %v1285_v25  ;;  %v270_v0 = vsub.f32 %v264_v30, %v269_v62 }
 0xa0e   :  { %v1287_v26 = vsel %vm193_vm1, %v1286_v35, 0.0  ;;  %v271_v2 = vmul.f32 1.442695, %v270_v0 }
 0xa0f   :  { %1288 = vadd.xlane.f32.xlu0 %v1287_v26 }
 0xa13   :  { %280 = vmax.xlane.f32.xlu0 %v279_v36 }
 0xa9c   :  { %v1289_v37 = vpop.xlane.xlu0 %1288 }
 0xa9d   :  { %v1290_v38 = vmul.f32 0.015625, %v1289_v37 }
 0xa9f   :  { %v1291_v39 = vadd.f32 1e-05, %v1290_v38 }
 0xaa0   :  { %v281_v61 = vpop.xlane.xlu0 %280 }
 0xaa1   :  { %1968 = vrsqrt.f32 %v1291_v39  ;;  %v282_v63 = vsub.f32 %v2184_v6, %v281_v61 }
 0xaa3   :  { %v283_v1 = vmul.f32 1.442695, %v282_v63 }
 0xaa5   :  { %1970 = vpow2.f32 %v283_v1 }
 0xaa6   :  { %1972 = vpow2.f32 %v271_v2 }
 0xaab   :  { %v1969_v40 = vpop.eup %1968 }
 0xaac   :  { %v1293_v42 = vmul.f32 %v1969_v40, %v1285_v25 }
 0xaae   :  { %v1294_v44 = vmul.f32 %v1293_v42, %v91_v41 }
 0xaaf   :  { %v1971_v10 = vpop.eup %1970 }
 0xab0   :  { %v1295_v46 = vadd.f32 %v1294_v44, %v92_v43  ;;  %v285_v11 = vsel %vm193_vm1, %v1971_v10, 0.0 }
 0xab2   :  { %v1912_v47 = vpack.c.bf16 %v1295_v46, %v2184_v6  ;;  %v1973_v6 = vpop.eup %1972 }
 0xab3   :  { %v273_v12 = vsel %vm193_vm1, %v1973_v6, 0.0 }
 0xab4   :  { %1913 = vmatprep.subr.bf16.mxu0 %v1912_v47 }
 0xab5   :  { %1915 = vmatpush3.bf16.msra.mxu0 %v1912_v47 }
 0xab6   :  { %1917 = vmatprep.subr.bf16.mxu0 %v1916_v48 }
 0xab8   :  { %1795 = vmatmul.mubr.msk.f32.vlgmr.msra.gmra.mrb[6].mxu0 %vm1296_vm4, %v28_v51 }
 0xab9   :  { %1919 = vmatpush3.bf16.msra.mxu0 %v1916_v48 }
 0xaba   :  { %1921 = vmatprep.subr.bf16.mxu0 %v1920_v52 }
 0xabd   :  { %1923 = vmatpush3.bf16.msra.mxu0 %v1920_v52 }
 0xabe   :  { %1925 = vmatprep.subr.bf16.mxu0 %v1924_v55 }
 0xac1   :  { %1927 = vmatpush3.bf16.msra.mxu0 %v1924_v55 }
 0xac2   :  { %1929 = vmatprep.subr.bf16.mxu0 %v1928_v58 }
 0xac5   :  { %1931 = vmatpush3.bf16.msra.mxu0 %v1928_v58 }
 0xb8b   :  { %v1796_v59 = vpop.f32.mrb[6].mxu0 }
 0xb8c   :  { %v1369_v60 = vpop.f32.mrb[7].mxu0 }
 0xb8d   :  { %1813 = vmatprep.mubr.msk.f32.mxu0 %vm193_vm1, %v1369_v60 }
 0xb8e   :  { %1814 = vmatmul.mubr.msk.f32.vlgmr.msra.gmra.mrb[8].mxu0 %vm193_vm1, %v1796_v59 }
 0xc61   :  { %v1815_v5 = vpop.f32.mrb[8].mxu0 }
 0xc62   :  { %v1456_v7 = vadd.f32 %v1815_v5, %v94_v4  ;;  %v1450_v8 = vpop.f32.mrb[9].mxu0 }
 0xc63   :  { %v1451_v9 = vadd.f32 %v1450_v8, %v94_v4 }
 0xc64   :  { %1460 = vst [vmem:[%s2450_s6 + $0x8] sm:$0xff] %v1456_v7  ;;  %1463 = vmax.xlane.f32.xlu0 %v1456_v7  ;;  %v1501_v3 = vmul.f32 %v1456_v7, %v26_v28 }
 0xc65   :  { %1459 = vst [vmem:[%s2450_s6] sm:$0xff] %v1451_v9  ;;  %1461 = vmax.xlane.f32.xlu1 %v1451_v9  ;;  %v1500_v36 = vmul.f32 %v1451_v9, %v25_v31 }
 0xc67   :  { %v1502_v38 = vadd.f32 %v1501_v3, %v1500_v36 }
 0xc68   :  { %286 = vadd.xlane.f32.xlu0 %v285_v11 }
 0xc69   :  { %274 = vadd.xlane.f32.xlu1 %v273_v12 }
 0xcf1   :  { %v1464_v29 = vpop.xlane.xlu0 %1463 }
 0xcf2   :  { %v1466_v13 = vsub.f32 %v1456_v7, %v1464_v29  ;;  %v1462_v14 = vpop.xlane.xlu1 %1461 }
 0xcf3   :  { %v1465_v15 = vsub.f32 %v1451_v9, %v1462_v14 }
 0xcf4   :  { %v1469_v16 = vmul.f32 1.442695, %v1466_v13 }
 0xcf5   :  { %v1467_v17 = vmul.f32 1.442695, %v1465_v15  ;;  %v287_v18 = vpop.xlane.xlu0 %286 }
 0xcf6   :  { %1974 = vpow2.f32 %v1469_v16  ;;  %v275_v19 = vpop.xlane.xlu1 %274 }
 0xcf7   :  { %1976 = vpow2.f32 %v1467_v17 }
 0xcf8   :  { %1978 = vlog2.f32 %v287_v18 }
 0xcf9   :  { %1980 = vlog2.f32 %v275_v19 }
 0xcfa   :  { %1982 = vrcp.f32 %v287_v18 }
 0xd00   :  { %v1975_v20 = vpop.eup %1974 }
 0xd01   :  { %v1977_v21 = vpop.eup %1976  ;;  %1473 = vadd.xlane.f32.xlu0 %v1975_v20 }
 0xd02   :  { %1471 = vadd.xlane.f32.xlu1 %v1977_v21  ;;  %v1979_v22 = vpop.eup %1978 }
 0xd03   :  { %v1981_v23 = vpop.eup %1980  ;;  %v291_v27 = vmul.f32 0.6931472, %v1979_v22 }
 0xd04   :  { %v277_v30 = vmul.f32 0.6931472, %v1981_v23  ;;  %v1983_v24 = vpop.eup %1982 }
 0xd05   :  { %1483 = vadd.xlane.f32.xlu0 %v26_v28  ;;  %v292_v33 = vsub.f32 %v282_v63, %v291_v27  ;;  %v289_v25 = vmul.f32 %v1983_v24, %v1971_v10 }
 0xd06   :  { %1481 = vadd.xlane.f32.xlu1 %v25_v31  ;;  %v278_v34 = vsub.f32 %v270_v0, %v277_v30 }
 0xd08   :  { %v293_v35 = vsub.f32 %v292_v33, %v278_v34 }
 0xd0a   :  { %v294_v26 = vmul.f32 %v293_v35, %v289_v25 }
 0xd0c   :  { %v295_v37 = vsel %vm193_vm1, %v294_v26, 0.0 }
 0xd0d   :  { %296 = vadd.xlane.f32.xlu1 %v295_v37 }
 0xd11   :  { %1503 = vadd.xlane.f32.xlu1 %v1502_v38 }
 0xd8e   :  { %v1474_v39 = vpop.xlane.xlu0 %1473 }
 0xd8f   :  { %1984 = vlog2.f32 %v1474_v39  ;;  %v1472_v40 = vpop.xlane.xlu1 %1471 }
 0xd90   :  { %1986 = vlog2.f32 %v1472_v40 }
 0xd92   :  { %v1484_v46 = vpop.xlane.xlu0 %1483 }
 0xd93   :  { %v1482_v41 = vpop.xlane.xlu1 %1481 }
 0xd99   :  { %v1985_v42 = vpop.eup %1984 }
 0xd9a   :  { %v1987_v43 = vpop.eup %1986  ;;  %v1478_v44 = vmul.f32 0.6931472, %v1985_v42  ;;  %v297_v32 = vpop.xlane.xlu1 %296 }
 0xd9b   :  { %v1476_v45 = vmul.f32 0.6931472, %v1987_v43  ;;  %v298_v47 = vrot.slane %v297_v32, 4 }
 0xd9c   :  { %v1480_v48 = vadd.f32 %v1478_v44, %v1464_v29 }
 0xd9d   :  { %v1479_v49 = vadd.f32 %v1476_v45, %v1462_v14  ;;  %v299_v50 = vadd.f32 %v298_v47, %v297_v32 }
 0xd9e   :  { %v1486_v51 = vmul.f32 %v1484_v46, %v1480_v48  ;;  %v1504_v60 = vpop.xlane.xlu1 %1503 }
 0xd9f   :  { %v1485_v52 = vmul.f32 %v1482_v41, %v1479_v49  ;;  %v300_v53 = vrot.slane %v299_v50, 2  ;;  %v1505_v61 = vrot.slane %v1504_v60, 4 }
 0xda0   :  { %v1489_v54 = vsel %vm1487_vm5, %v1486_v51, 0.0 }
 0xda1   :  { %v1488_v55 = vsel %vm1487_vm5, %v1485_v52, 0.0  ;;  %v301_v57 = vadd.f32 %v300_v53, %v299_v50  ;;  %v1506_v62 = vadd.f32 %v1505_v61, %v1504_v60 }
 0xda2   :  { %v1490_v56 = vadd.f32 %v1489_v54, %v1488_v55 }
 0xda3   :  { %v302_v58 = vrot.slane %v301_v57, 1  ;;  %v1507_v63 = vrot.slane %v1506_v62, 2 }
 0xda4   :  { %1491 = vadd.xlane.f32.xlu0 %v1490_v56 }
 0xda5   :  { %v303_v59 = vadd.f32 %v302_v58, %v301_v57  ;;  %v1508_v4 = vadd.f32 %v1507_v63, %v1506_v62 }
 0xda7   :  { %1938 = vpush %v303_v59  ;;  %v1509_v8 = vrot.slane %v1508_v4, 1 }
 0xda9   :  { %v1510_v6 = vadd.f32 %v1509_v8, %v1508_v4 }
 0xdd8   :  { %s1939_s1 = spop %1938 }
 0xdd9   :  { %s305_s7 = smul.f32 0.125, %s1939_s1 }
 0xddb   :  { %s1513_s10 = smul.f32 0.5, %s305_s7 }
 0xe31   :  { %v1492_v0 = vpop.xlane.xlu0 %1491 }
 0xe32   :  { %v1493_v1 = vrot.slane %v1492_v0, 4 }
 0xe34   :  { %v1494_v2 = vadd.f32 %v1493_v1, %v1492_v0 }
 0xe36   :  { %v1495_v5 = vrot.slane %v1494_v2, 2 }
 0xe38   :  { %v1496_v7 = vadd.f32 %v1495_v5, %v1494_v2 }
 0xe3a   :  { %v1497_v9 = vrot.slane %v1496_v7, 1 }
 0xe3c   :  { %v1498_v10 = vadd.f32 %v1497_v9, %v1496_v7 }
 0xe3e   :  { %1940 = vpush %v1498_v10 }
 0xe3f   :  { %1942 = vpush %v1510_v6 }
 0xe6f   :  { %s1941_s8 = spop %1940 }
 0xe70   :  { %s1943_s9 = spop %1942 }
 0xe71   :  { %s1512_s11 = ssub.f32 %s1941_s8, %s1943_s9 }
 0xe73   :  { %s1514_s12 = sadd.f32 %s1513_s10, %s1512_s11 }
 0xe75   :  { %1516 = sst [smem:[#allocation2]] %s1514_s12 }
 0xe76   :  { %1997 = shalt.err (!%p1994_p2)
}
 0xe77   :  { %s2005_s19 = smov [#allocation2]  }
 0xe78   :  { %1524 = dma.smem_to_hbm %s2005_s19, 16, %s2449_s5, [#allocation3]  }
 0xe79   :  { %1998 = dma.done.wait [#allocation3], 16  }
 0xe7a   :  { %1999 = vsyncadd [#allocation3], 4294967280 }
 0xe7b   :  { %1532 = sfence }
 0xe7c   :  { %1533 = vsyncpa [#allocation3], 1 }

</bundles_post_ra>
